<compile_context>
chip_gen: v7x
topology: tpu7x:2x2x1
jax: 0.10.0
libtpu: 0.0.40
codegen_flags: <defaults>
</compile_context>

<pallas_src>
import functools

import jax
import jax.numpy as jnp
from jax import lax
from jax.experimental import pallas as pl
from jax.experimental.pallas import tpu as pltpu

_NEG = -1e30  # effective -inf for padded CRF tag columns (finite => no NaN risk)


def _round_up(n, m):
    return ((n + m - 1) // m) * m


# ----------------------------------------------------------------------------
# Pallas kernel: conv (folded K*E contraction) + bias + ReLU + FC + bias
# ----------------------------------------------------------------------------
def _emissions_kernel(x_ref, w1_ref, b1_ref, w2_ref, b2_ref, o_ref, *, K, pad):
    # x_ref:  (Bt, L_p, E)    bf16  embedding tile, Bt sequences
    # w1_ref: (K*E, F_p)      bf16  folded conv taps (VMEM-resident across grid)
    # b1_ref: (1, F_p)        f32
    # w2_ref: (F_p, T_p)      bf16
    # b2_ref: (1, T_p)        f32
    # o_ref:  (Bt, L_p, T_p)  f32   emissions (tag-padded)
    Bt, L_p, E = x_ref.shape
    T_p = w2_ref.shape[1]

    x = x_ref[...]                                    # one load of the tile

    # Per-sequence 'same'-conv halo, built in VMEM (no HBM pad round-trip).
    pieces = []
    if pad > 0:
        pieces.append(jnp.zeros((Bt, pad, E), x.dtype))
    pieces.append(x)
    if K - 1 - pad > 0:
        pieces.append(jnp.zeros((Bt, K - 1 - pad, E), x.dtype))
    x_win = jnp.concatenate(pieces, axis=1) if len(pieces) > 1 else x

    # Fold the K taps into the contraction dim: one (Bt*L_p, K*E) operand.
    taps = [x_win[:, k:k + L_p, :] for k in range(K)]
    xi = taps[0] if K == 1 else jnp.concatenate(taps, axis=-1)
    xi = xi.reshape(Bt * L_p, K * E)

    acc = jnp.dot(xi, w1_ref[...], preferred_element_type=jnp.float32)
    h = jnp.maximum(acc + b1_ref[...], 0.0)           # conv bias + ReLU in f32
    # TODO(synk): dropout is identity on the inference/decode path.
    o = jnp.dot(h.astype(jnp.bfloat16), w2_ref[...],
                preferred_element_type=jnp.float32) + b2_ref[...]
    o_ref[...] = o.reshape(Bt, L_p, T_p)


# ----------------------------------------------------------------------------
# One-time parameter preparation (hoisted out of the per-call path)
# ----------------------------------------------------------------------------
def prepare_params(params):
    w_conv = params["conv_w"]                         # (F, E, K) PyTorch layout
    F, E, K = w_conv.shape
    T = params["fc_w"].shape[0]
    F_p = _round_up(F, 128)
    T_p = _round_up(T, 128)

    # Fold taps into contraction: (F,E,K) -> (K,E,F) -> (K*E,F), pad lanes, bf16
    w1 = jnp.transpose(w_conv, (2, 1, 0)).reshape(K * E, F)
    w1 = jnp.pad(w1, ((0, 0), (0, F_p - F))).astype(jnp.bfloat16)
    b1 = jnp.pad(params["conv_b"], (0, F_p - F)).reshape(1, F_p).astype(jnp.float32)
    w2 = jnp.pad(params["fc_w"].T,
                 ((0, F_p - F), (0, T_p - T))).astype(jnp.bfloat16)
    b2 = jnp.pad(params["fc_b"], (0, T_p - T)).reshape(1, T_p).astype(jnp.float32)

    # CRF params padded to T_p with -1e30 so padded tag columns never win argmax
    crf_start = jnp.pad(params["crf_start"].astype(jnp.float32),
                        (0, T_p - T), constant_values=_NEG)
    crf_end = jnp.pad(params["crf_end"].astype(jnp.float32),
                      (0, T_p - T), constant_values=_NEG)
    crf_trans = jnp.pad(params["crf_trans"].astype(jnp.float32),
                        ((0, T_p - T), (0, T_p - T)), constant_values=_NEG)

    return {
        "emb_table": params["embedding"].astype(jnp.bfloat16),   # (V, E)
        "w1": w1, "b1": b1, "w2": w2, "b2": b2,
        "K": int(K), "E": int(E), "F": int(F), "T": int(T),
        "crf_start": crf_start, "crf_end": crf_end, "crf_trans": crf_trans,
    }


def _choose_bt(B, L_p, E, F_p, T_p, K):
    """Sequences per grid step: big MXU M-tiles, bounded VMEM, >=4 steps if possible."""
    per_seq = (2 * L_p * E * 2                 # x tile (bf16) x2 buffers
               + 2 * L_p * T_p * 4             # out tile (f32) x2 buffers
               + L_p * (K * E * 2 + F_p * 4 + T_p * 4))   # in-kernel temps
    vmem_cap = max(1, (16 * 1024 * 1024) // per_seq)      # safe vs v7x 64 MiB
    rows_cap = max(1, 512 // L_p)                         # ~512-row matmul tiles
    cap = min(B, rows_cap, vmem_cap)
    # Prefer >= 4 grid steps (pipelining / megacore) if tiles stay >= 128 rows.
    if B // cap < 4:
        alt = max(1, B // 4)
        if alt * L_p >= 128:
            cap = min(cap, alt)
    for d in range(cap, 0, -1):
        if B % d == 0:
            return d
    return 1


# ----------------------------------------------------------------------------
# Emissions: embedding lookup (JAX gather) + fused Pallas conv/ReLU/FC
# TODO(synk): the embedding gather could also move in-kernel via scalar
#             prefetch of token ids; kept in JAX (single HBM pass of emb).
# ----------------------------------------------------------------------------
def cnn_emissions(token_ids, prep):
    B, L = token_ids.shape
    K, E, F, T = prep["K"], prep["E"], prep["F"], prep["T"]
    F_p = prep["w1"].shape[1]
    T_p = prep["w2"].shape[1]
    pad = K // 2   # TODO(synk): 'same' padding semantics assume odd kernel_size

    L_p = _round_up(L, 8)

    emb = jnp.take(prep["emb_table"], token_ids, axis=0)       # (B, L, E) bf16
    if L_p != L:
        # zero rows double as the conv 'same' boundary; sliced off after decode
        emb = jnp.pad(emb, ((0, 0), (0, L_p - L), (0, 0)))

    Bt = _choose_bt(B, L_p, E, F_p, T_p, K)
    grid = (B // Bt,)

    flops = 2 * B * L_p * (K * E * F_p + F_p * T_p)
    bytes_accessed = (B * L_p * E * 2                  # x (bf16)
                      + K * E * F_p * 2 + F_p * 4      # conv weights/bias
                      + F_p * T_p * 2 + T_p * 4        # fc weights/bias
                      + B * L_p * T_p * 4)             # output (f32)

    out = pl.pallas_call(
        functools.partial(_emissions_kernel, K=K, pad=pad),
        out_shape=jax.ShapeDtypeStruct((B, L_p, T_p), jnp.float32),
        grid=grid,
        in_specs=[
            pl.BlockSpec((Bt, L_p, E), lambda b: (b, 0, 0)),     # x tile
            pl.BlockSpec((K * E, F_p), lambda b: (0, 0)),        # folded conv W
            pl.BlockSpec((1, F_p), lambda b: (0, 0)),            # conv b
            pl.BlockSpec((F_p, T_p), lambda b: (0, 0)),          # fc W
            pl.BlockSpec((1, T_p), lambda b: (0, 0)),            # fc b
        ],
        out_specs=pl.BlockSpec((Bt, L_p, T_p), lambda b: (b, 0, 0)),
        compiler_params=pltpu.CompilerParams(
            dimension_semantics=("parallel",),         # megacore on v7x
            vmem_limit_bytes=32 * 1024 * 1024,         # safe on v5e/v6e/v7x
        ),
        cost_estimate=pl.CostEstimate(
            flops=flops, transcendentals=0, bytes_accessed=bytes_accessed),
    )(emb, prep["w1"], prep["b1"], prep["w2"], prep["b2"])

    if L_p != L:
        out = out[:, :L, :]          # no-op when L is already 8-aligned
    return out                       # (B, L, T_p): tag dim stays padded


# ----------------------------------------------------------------------------
# CRF Viterbi decode (torchcrf semantics, batch_first=True, full-length mask).
# Operates directly on the tag-padded (T_p) emissions; padded tags carry -1e30
# start/end/transition scores so they can never win an argmax.
# TODO(synk): tiny sequential DP with data-dependent backtrace; kept in plain
#             JAX (lax.scan) rather than Pallas.
# ----------------------------------------------------------------------------
def crf_decode(emissions, start_trans, end_trans, trans):
    def single(em):                                   # em: (L, T_p)
        score0 = start_trans + em[0]

        def step(score, e_t):
            total = score[:, None] + trans + e_t[None, :]   # (prev, next)
            return jnp.max(total, axis=0), jnp.argmax(total, axis=0)

        score, hist = lax.scan(step, score0, em[1:])        # hist: (L-1, T_p)
        score = score + end_trans
        last = jnp.argmax(score).astype(jnp.int32)

        def back(tag, idx_t):
            prev = idx_t[tag]
            return prev, prev

        _, prevs = lax.scan(back, last, hist, reverse=True)  # (L-1,)
        return jnp.concatenate([prevs.astype(jnp.int32), last[None]])

    return jax.vmap(single)(emissions)


def cnn_forward(token_ids, prep):
    """Equivalent of CNN.forward(x, tags=None) -> best tag sequences (B, L)."""
    emissions = cnn_emissions(token_ids, prep)
    return crf_decode(emissions, prep["crf_start"], prep["crf_end"],
                      prep["crf_trans"])


# ----------------------------------------------------------------------------
# Deterministic parameter init (shapes from the module's __init__)
# ----------------------------------------------------------------------------
def init_params(key, vocab_size, embedding_dim, tagset_size,
                num_filters=100, kernel_size=3):
    ks = jax.random.split(key, 9)
    conv_bound = 1.0 / jnp.sqrt(embedding_dim * kernel_size)
    fc_bound = 1.0 / jnp.sqrt(num_filters)
    return {
        "embedding": jax.random.normal(ks[0], (vocab_size, embedding_dim),
                                       jnp.float32),
        "conv_w": jax.random.uniform(ks[1],
                                     (num_filters, embedding_dim, kernel_size),
                                     jnp.float32, -conv_bound, conv_bound),
        "conv_b": jax.random.uniform(ks[2], (num_filters,), jnp.float32,
                                     -conv_bound, conv_bound),
        "fc_w": jax.random.uniform(ks[3], (tagset_size, num_filters),
                                   jnp.float32, -fc_bound, fc_bound),
        "fc_b": jax.random.uniform(ks[4], (tagset_size,), jnp.float32,
                                   -fc_bound, fc_bound),
        "crf_start": jax.random.uniform(ks[5], (tagset_size,), jnp.float32,
                                        -0.1, 0.1),
        "crf_end": jax.random.uniform(ks[6], (tagset_size,), jnp.float32,
                                      -0.1, 0.1),
        "crf_trans": jax.random.uniform(ks[7], (tagset_size, tagset_size),
                                        jnp.float32, -0.1, 0.1),
    }


if __name__ == "__main__":
    VOCAB, EMB, TAGS = 50, 32, 5
    B, L = 2, 8

    key = jax.random.PRNGKey(0)
    k_param, k_tok = jax.random.split(key)
    params = init_params(k_param, VOCAB, EMB, TAGS)
    prep = prepare_params(params)                     # one-time weight prep
    tokens = jax.random.randint(k_tok, (B, L), 0, VOCAB, dtype=jnp.int32)

    tags = jax.block_until_ready(cnn_forward(tokens, prep))
    assert tags.shape == (B, L)
    assert bool(jnp.all((tags >= 0) & (tags < TAGS)))
    print("KERNEL_OK")
</pallas_src>

<mosaic_0001>
module attributes {stable_mosaic.version = 11 : i64} {
  func.func @_emissions_kernel(%arg0: i32, %arg1: memref<2x8x32xbf16, #tpu.memory_space<vmem>>, %arg2: memref<96x128xbf16, #tpu.memory_space<vmem>>, %arg3: memref<1x128xf32, #tpu.memory_space<vmem>>, %arg4: memref<128x128xbf16, #tpu.memory_space<vmem>>, %arg5: memref<1x128xf32, #tpu.memory_space<vmem>>, %arg6: memref<2x8x128xf32, #tpu.memory_space<vmem>>) attributes {dimension_semantics = [#tpu.dimension_semantics<parallel>], iteration_bounds = array<i64: 1>, scalar_prefetch = 0 : i64, scratch_operands = 0 : i64, tpu.core_type = #tpu.core_type<tc>, window_params = [{transform_indices = @transform_0, window_bounds = array<i64: 2, 8, 32>}, {pipeline_mode = #tpu.pipeline_mode<synchronous>, transform_indices = @transform_1, window_bounds = array<i64: 96, 128>}, {pipeline_mode = #tpu.pipeline_mode<synchronous>, transform_indices = @transform_2, window_bounds = array<i64: 1, 128>}, {pipeline_mode = #tpu.pipeline_mode<synchronous>, transform_indices = @transform_3, window_bounds = array<i64: 128, 128>}, {pipeline_mode = #tpu.pipeline_mode<synchronous>, transform_indices = @transform_4, window_bounds = array<i64: 1, 128>}, {transform_indices = @transform_5, window_bounds = array<i64: 2, 8, 128>}]} {
    %c0 = arith.constant 0 : index
    %c0_0 = arith.constant 0 : index
    %c0_1 = arith.constant 0 : index
    %0 = vector.load %arg1[%c0, %c0_0, %c0_1] : memref<2x8x32xbf16, #tpu.memory_space<vmem>>, vector<2x8x32xbf16>
    %cst = arith.constant 0.000000e+00 : bf16
    %1 = vector.broadcast %cst : bf16 to vector<2x1x32xbf16>
    %cst_2 = arith.constant 0.000000e+00 : bf16
    %2 = vector.broadcast %cst_2 : bf16 to vector<2x1x32xbf16>
    %3 = tpu.concatenate %1, %0, %2 in 1 : vector<2x1x32xbf16>, vector<2x8x32xbf16>, vector<2x1x32xbf16> -> vector<2x10x32xbf16>
    %4 = vector.extract_strided_slice %3 {offsets = [0, 0, 0], sizes = [2, 8, 32], strides = [1, 1, 1]} : vector<2x10x32xbf16> to vector<2x8x32xbf16>
    %5 = vector.extract_strided_slice %3 {offsets = [0, 1, 0], sizes = [2, 8, 32], strides = [1, 1, 1]} : vector<2x10x32xbf16> to vector<2x8x32xbf16>
    %6 = vector.extract_strided_slice %3 {offsets = [0, 2, 0], sizes = [2, 8, 32], strides = [1, 1, 1]} : vector<2x10x32xbf16> to vector<2x8x32xbf16>
    %7 = tpu.concatenate %4, %5, %6 in 2 : vector<2x8x32xbf16>, vector<2x8x32xbf16>, vector<2x8x32xbf16> -> vector<2x8x96xbf16>
    %8 = vector.shape_cast %7 : vector<2x8x96xbf16> to vector<16x96xbf16>
    %c0_3 = arith.constant 0 : index
    %c0_4 = arith.constant 0 : index
    %9 = vector.load %arg2[%c0_3, %c0_4] : memref<96x128xbf16, #tpu.memory_space<vmem>>, vector<96x128xbf16>
    %cst_5 = arith.constant dense<0.000000e+00> : vector<16x128xf32>
    %10 = tpu.matmul %8, %9, %cst_5 {dimension_numbers = #tpu.dot_dimension_numbers<[1], [0], [0], [1], [0, 0, 1, 1], [], []>} : vector<16x96xbf16>, vector<96x128xbf16>, vector<16x128xf32> -> vector<16x128xf32>
    %c0_6 = arith.constant 0 : index
    %c0_7 = arith.constant 0 : index
    %11 = vector.load %arg3[%c0_6, %c0_7] : memref<1x128xf32, #tpu.memory_space<vmem>>, vector<1x128xf32>
    %12 = vector.broadcast %11 : vector<1x128xf32> to vector<16x128xf32>
    %13 = arith.addf %10, %12 : vector<16x128xf32>
    %cst_8 = arith.constant 0.000000e+00 : f32
    %14 = vector.broadcast %cst_8 : f32 to vector<16x128xf32>
    %15 = arith.maximumf %13, %14 : vector<16x128xf32>
    %16 = arith.truncf %15 : vector<16x128xf32> to vector<16x128xbf16>
    %c0_9 = arith.constant 0 : index
    %c0_10 = arith.constant 0 : index
    %17 = vector.load %arg4[%c0_9, %c0_10] : memref<128x128xbf16, #tpu.memory_space<vmem>>, vector<128x128xbf16>
    %cst_11 = arith.constant dense<0.000000e+00> : vector<16x128xf32>
    %18 = tpu.matmul %16, %17, %cst_11 {dimension_numbers = #tpu.dot_dimension_numbers<[1], [0], [0], [1], [0, 0, 1, 1], [], []>} : vector<16x128xbf16>, vector<128x128xbf16>, vector<16x128xf32> -> vector<16x128xf32>
    %c0_12 = arith.constant 0 : index
    %c0_13 = arith.constant 0 : index
    %19 = vector.load %arg5[%c0_12, %c0_13] : memref<1x128xf32, #tpu.memory_space<vmem>>, vector<1x128xf32>
    %20 = vector.broadcast %19 : vector<1x128xf32> to vector<16x128xf32>
    %21 = arith.addf %18, %20 : vector<16x128xf32>
    %22 = vector.shape_cast %21 : vector<16x128xf32> to vector<2x8x128xf32>
    %c0_14 = arith.constant 0 : index
    %c0_15 = arith.constant 0 : index
    %c0_16 = arith.constant 0 : index
    %23 = vector.load %arg6[%c0_14, %c0_15, %c0_16] : memref<2x8x128xf32, #tpu.memory_space<vmem>>, vector<2x8x128xf32>
    tpu.vector_store %arg6[%c0_14, %c0_15, %c0_16], %22 {strides = array<i32>} : memref<2x8x128xf32, #tpu.memory_space<vmem>>, vector<2x8x128xf32>,
    return
  }
  func.func @transform_0(%arg0: i32) -> (i32, i32, i32) {
    %c0_i32 = arith.constant 0 : i32
    %c0_i32_0 = arith.constant 0 : i32
    %c0_i32_1 = arith.constant 0 : i32
    return %arg0, %c0_i32, %c0_i32_0 : i32, i32, i32
  }
  func.func @transform_1(%arg0: i32) -> (i32, i32) {
    %c0_i32 = arith.constant 0 : i32
    %c0_i32_0 = arith.constant 0 : i32
    %c0_i32_1 = arith.constant 0 : i32
    return %c0_i32, %c0_i32_0 : i32, i32
  }
  func.func @transform_2(%arg0: i32) -> (i32, i32) {
    %c0_i32 = arith.constant 0 : i32
    %c0_i32_0 = arith.constant 0 : i32
    %c0_i32_1 = arith.constant 0 : i32
    return %c0_i32, %c0_i32_0 : i32, i32
  }
  func.func @transform_3(%arg0: i32) -> (i32, i32) {
    %c0_i32 = arith.constant 0 : i32
    %c0_i32_0 = arith.constant 0 : i32
    %c0_i32_1 = arith.constant 0 : i32
    return %c0_i32, %c0_i32_0 : i32, i32
  }
  func.func @transform_4(%arg0: i32) -> (i32, i32) {
    %c0_i32 = arith.constant 0 : i32
    %c0_i32_0 = arith.constant 0 : i32
    %c0_i32_1 = arith.constant 0 : i32
    return %c0_i32, %c0_i32_0 : i32, i32
  }
  func.func @transform_5(%arg0: i32) -> (i32, i32, i32) {
    %c0_i32 = arith.constant 0 : i32
    %c0_i32_0 = arith.constant 0 : i32
    %c0_i32_1 = arith.constant 0 : i32
    return %arg0, %c0_i32, %c0_i32_0 : i32, i32, i32
  }
}

</mosaic_0001>

<bundles_post_ra>
// kernel: tpu_custom_call.1
= control target key start
LH: loop header
LB: loop body
LE: loop exit
PB: predicated region body
PF: predicated region fallthrough
CT: control target
= control target key end

     0   :  { %10 = vsyncpa [#allocation3], 0  ;;  %s703_s0 = inlined_call_operand.hbm [shape: bf16[2,8,32], index: 0, kind: input, shape index: {}]   ;;  %s704_s1 = inlined_call_operand.hbm [shape: bf16[96,128], index: 1, kind: input, shape index: {}]   ;;  %s705_s2 = inlined_call_operand.vmem [shape: f32[1,128], index: 2, kind: input, shape index: {}]   ;;  %s706_s3 = inlined_call_operand.hbm [shape: bf16[128,128], index: 3, kind: input, shape index: {}]   ;;  %s707_s4 = inlined_call_operand.vmem [shape: f32[1,128], index: 4, kind: input, shape index: {}]   ;;  %s708_s5 = inlined_call_operand.hbm [shape: f32[2,8,128], index: 5, kind: output, shape index: {}]  }
   0x1   :  { %11 = vsyncpa [#allocation6], 0 }
   0x2   :  { %12 = vsyncpa [#allocation4], 0  ;;  %s566_s18 = smov [#allocation5]   ;;  %s567_s20 = smov [#allocation2]  }
   0x3   :  { %s30_s19 = sshll.u32 %s566_s18, 4  ;;  %s18_s21 = sshll.u32 %s567_s20, 4  ;;  %s31_s19 = int_to_ptr.vmem [resolvable:$true] %s30_s19  ;;  %s607_s21 = int_to_ptr.vmem [resolvable:$true] %s18_s21 }
   0x4   :  { %s472_s24 = scalar_lea.hbm %s704_s1, 768 }
   0x5   :  { %p473_p0 = scmp.ne.s32.totalorder %s704_s1, %s472_s24  ;;  %p476_p1 = scmp.lt.u32.totalorder %s472_s24, %s704_s1 }
   0x7   :  { %p478_p2 = pnand %p476_p1, %p473_p0 }
   0x9   :  { %481 = shalt.err (!%p478_p2)
}
   0xa   :  { %s482_s29 = scalar_lea.vmem %s31_s19, 768  ;;  %p487_p4 = scmp.lt.s32.totalorder %s31_s19, %s31_s19 }
   0xb   :  { %p483_p3 = scmp.ne.s32.totalorder %s31_s19, %s482_s29  ;;  %p488_p5 = scmp.lt.s32.totalorder %s482_s29, %s482_s29 }
   0xd   :  { %p489_p6 = por %p488_p5, %p487_p4 }
   0xf   :  { %p490_p7 = pnand %p489_p6, %p483_p3 }
  0x11   :  { %493 = shalt.err (!%p490_p7)
}
  0x12   :  { %s568_s30 = smov 64   ;;  %s569_s6 = smov 4  }
  0x13   :  { %36 = dma.hbm_to_vmem [thread:$0]  %s704_s1, 768, %s31_s19, [#allocation6], %s568_s30, %s568_s30, %s569_s6  }
  0x14   :  { %s494_s11 = scalar_lea.hbm %s703_s0, 128 }
  0x15   :  { %p495_p8 = scmp.ne.s32.totalorder %s703_s0, %s494_s11  ;;  %p498_p9 = scmp.lt.u32.totalorder %s494_s11, %s703_s0 }
  0x17   :  { %p500_p10 = pnand %p498_p9, %p495_p8 }
  0x19   :  { %503 = shalt.err (!%p500_p10)
}
  0x1a   :  { %s504_s16 = scalar_lea.vmem %s607_s21, 128  ;;  %p509_p12 = scmp.lt.s32.totalorder %s607_s21, %s607_s21 }
  0x1b   :  { %p505_p11 = scmp.ne.s32.totalorder %s607_s21, %s504_s16  ;;  %p510_p13 = scmp.lt.s32.totalorder %s504_s16, %s504_s16 }
  0x1d   :  { %p511_p0 = por %p510_p13, %p509_p12 }
  0x1f   :  { %p512_p1 = pnand %p511_p0, %p505_p11 }
  0x21   :  { %515 = shalt.err (!%p512_p1)
}
  0x22   :  { %24 = dma.hbm_to_vmem [thread:$0]  %s703_s0, 128, %s607_s21, [#allocation3], %s568_s30, %s568_s30, %s569_s6  }
  0x23   :  { %s570_s18 = smov [#allocation7]   ;;  %s516_s23 = scalar_lea.hbm %s706_s3, 1024 }
  0x24   :  { %s44_s19 = sshll.u32 %s570_s18, 4  ;;  %p517_p2 = scmp.ne.s32.totalorder %s706_s3, %s516_s23  ;;  %s45_s19 = int_to_ptr.vmem [resolvable:$true] %s44_s19 }
  0x25   :  { %p520_p3 = scmp.lt.u32.totalorder %s516_s23, %s706_s3 }
  0x27   :  { %p522_p4 = pnand %p520_p3, %p517_p2 }
  0x29   :  { %525 = shalt.err (!%p522_p4)
}
  0x2a   :  { %s526_s28 = scalar_lea.vmem %s45_s19, 1024  ;;  %p531_p6 = scmp.lt.s32.totalorder %s45_s19, %s45_s19 }
  0x2b   :  { %p527_p5 = scmp.ne.s32.totalorder %s45_s19, %s526_s28  ;;  %p532_p7 = scmp.lt.s32.totalorder %s526_s28, %s526_s28 }
  0x2d   :  { %p533_p8 = por %p532_p7, %p531_p6 }
  0x2f   :  { %p534_p9 = pnand %p533_p8, %p527_p5 }
  0x31   :  { %537 = shalt.err (!%p534_p9)
}
  0x32   :  { %50 = dma.hbm_to_vmem [thread:$0]  %s706_s3, 1024, %s45_s19, [#allocation6], %s568_s30, %s568_s30, %s569_s6  }
  0x33   :  { %560 = dma.done.wait [#allocation3], 128  }
  0x34   :  { %561 = vsyncadd [#allocation3], 4294967168 }
  0x35   :  { %562 = dma.done.wait [#allocation6], 1792  }
  0x36   :  { %563 = vsyncadd [#allocation6], 4294965504  ;;  %v571_v0 = vmov 0.0   ;;  %vm87_vm0 = vcmask 1040384   ;;  %vm88_vm1 = vsmask.f32 256 }
  0x37   :  { %409 = vmatprep.subr.bf16.mxu0 %v571_v0  ;;  %425 = vmatprep.subr.bf16.mxu1 %v571_v0  ;;  %vm93_vm2 = vsmask.f32 4352  ;;  %v456_v1 = vld [vmem:[#allocation2] ss:$0 sps:$4 sm:$0xff]   ;;  %v457_v2 = vld [vmem:[#allocation2 + $0x4] ss:$0 sps:$4 sm:$0xff]   ;;  %vm661_vm4 = vmand %vm87_vm0, %vm88_vm1 }
  0x38   :  { %v72_v3 = vshrl.u32 %v456_v1, 16  ;;  %v75_v4 = vshll.u32 %v456_v1, 16  ;;  %vm92_vm3 = vcmask 1044480   ;;  %v458_v5 = vld [vmem:[#allocation5] sm:$0xff]   ;;  %v79_v6 = vshrl.u32 %v457_v2, 16  ;;  %v459_v10 = vld [vmem:[#allocation5 + $0x8] sm:$0xff]  }
  0x39   :  { %v82_v7 = vshll.u32 %v457_v2, 16  ;;  %410 = vmatpush3.bf16.msra.mxu0 %v458_v5  ;;  %vm94_vm5 = vmand %vm92_vm3, %vm93_vm2  ;;  %v460_v15 = vld [vmem:[#allocation5 + $0x10] sm:$0xff]   ;;  %vm572_vm6 = vmmov 0   ;;  %v461_v24 = vld [vmem:[#allocation5 + $0x18] sm:$0xff]   ;;  %s573_s3 = smov 32   ;;  %vm123_vm7 = vcmask 261120  }
  0x3a   :  { %v74_v9 = vrot.slane %v72_v3, 7  ;;  %v81_v11 = vrot.slane %v79_v6, 7  ;;  %411 = vmatprep.subr.bf16.mxu0 %v571_v0  ;;  %421 = vmatprep.mubr.msk.bf16.mxu0 %vm572_vm6, %v571_v0  ;;  %v464_v25 = vld [vmem:[#allocation7] sm:$0xff]   ;;  %v465_v29 = vld [vmem:[#allocation7 + $0x8] sm:$0xff]   ;;  %v462_v32 = vld [vmem:[#allocation5 + $0x20] sm:$0xff]   ;;  %vm128_vm8 = vcmask 523264  }
  0x3b   :  { %441 = vmatprep.mubr.msk.bf16.mxu1 %vm572_vm6, %v571_v0  ;;  %426 = vmatpush3.bf16.msra.mxu1 %v464_v25  ;;  %v466_v33 = vld [vmem:[#allocation7 + $0x10] sm:$0xff]   ;;  %v463_v34 = vld [vmem:[#allocation5 + $0x28] sm:$0xff]   ;;  %v468_v36 = vld [vmem:[#allocation7 + $0x20] sm:$0xff]   ;;  %vm193_vm9 = vcmask 785408   ;;  %s574_s8 = smov [#allocation8]  }
  0x3c   :  { %v77_v12 = vor.u32 %v75_v4, %v74_v9  ;;  %v84_v13 = vor.u32 %v82_v7, %v81_v11  ;;  %427 = vmatprep.subr.bf16.mxu1 %v571_v0  ;;  %v467_v35 = vld [vmem:[#allocation7 + $0x18] sm:$0xff]   ;;  %v469_v37 = vld [vmem:[#allocation7 + $0x28] sm:$0xff]   ;;  %v470_v47 = vld [vmem:[#allocation7 + $0x30] sm:$0xff]   ;;  %s360_s9 = sshll.u32 %s574_s8, 4  ;;  %s361_s9 = int_to_ptr.vmem [resolvable:$true] %s360_s9 }
  0x3d   :  { %412 = vmatpush3.bf16.msra.mxu0 %v459_v10  ;;  %v471_v48 = vld [vmem:[#allocation7 + $0x38] sm:$0xff]   ;;  %v375_v49 = vld [vmem:[%s705_s2] ss:$0 sm:$0xff]  ;;  %s538_s2 = scalar_lea.vmem %s361_s9, 256  ;;  %p543_p11 = scmp.lt.s32.totalorder %s361_s9, %s361_s9 }
  0x3e   :  { %v90_v14 = vsel %vm661_vm4, 0, %v77_v12  ;;  %v91_v16 = vsel %vm661_vm4, 0, %v84_v13  ;;  %413 = vmatprep.subr.bf16.mxu0 %v571_v0  ;;  %v384_v59 = vld [vmem:[%s707_s4] ss:$0 sm:$0xff]  ;;  %p539_p10 = scmp.ne.s32.totalorder %s361_s9, %s538_s2  ;;  %p544_p12 = scmp.lt.s32.totalorder %s538_s2, %s538_s2 }
  0x3f   :  { %v95_v17 = vsel %vm94_vm5, %v90_v14, 0  ;;  %v96_v18 = vsel %vm94_vm5, %v91_v16, 0  ;;  %428 = vmatpush3.bf16.msra.mxu1 %v465_v29 }
  0x40   :  { %v98_v19 = vshrl.u32 %v95_v17, 16  ;;  %v100_v20 = vshll.u32 %v95_v17, 16  ;;  %v117_v21 = vrot.slane %v95_v17, 1  ;;  %v105_v22 = vshrl.u32 %v96_v18, 16  ;;  %429 = vmatprep.subr.bf16.mxu1 %v571_v0  ;;  %p545_p13 = por %p544_p12, %p543_p11 }
  0x41   :  { %v107_v23 = vshll.u32 %v96_v18, 16  ;;  %v118_v27 = vrot.slane %v96_v18, 1  ;;  %414 = vmatpush3.bf16.msra.mxu0 %v460_v15 }
  0x42   :  { %v102_v26 = vrot.slane %v100_v20, 1  ;;  %119 = vrot.lane.b32.xlu1 %v117_v21, %s568_s30  ;;  %415 = vmatprep.subr.bf16.mxu0 %v571_v0  ;;  %p546_p0 = pnand %p545_p13, %p539_p10 }
  0x43   :  { %v109_v28 = vrot.slane %v107_v23, 1  ;;  %430 = vmatpush3.bf16.msra.mxu1 %v466_v33 }
  0x44   :  { %v103_v30 = vor.u32 %v102_v26, %v98_v19  ;;  %431 = vmatprep.subr.bf16.mxu1 %v571_v0 }
  0x45   :  { %v110_v31 = vor.u32 %v109_v28, %v105_v22  ;;  %416 = vmatpush3.bf16.msra.mxu0 %v461_v24 }
  0x46   :  { %111 = vrot.lane.b32.xlu0 %v103_v30, %s573_s3  ;;  %121 = vrot.lane.b32.xlu1 %v118_v27, %s568_s30 }
  0x47   :  { %417 = vmatprep.subr.bf16.mxu0 %v571_v0  ;;  %432 = vmatpush3.bf16.msra.mxu1 %v467_v35 }
  0x48   :  { %433 = vmatprep.subr.bf16.mxu1 %v571_v0 }
  0x49   :  { %418 = vmatpush3.bf16.msra.mxu0 %v462_v32 }
  0x4a   :  { %113 = vrot.lane.b32.xlu0 %v110_v31, %s573_s3  ;;  %419 = vmatprep.subr.bf16.mxu0 %v571_v0 }
  0x4b   :  { %434 = vmatpush3.bf16.msra.mxu1 %v468_v36 }
  0x4c   :  { %435 = vmatprep.subr.bf16.mxu1 %v571_v0 }
  0x4d   :  { %420 = vmatpush3.bf16.msra.mxu0 %v463_v34 }
  0x4f   :  { %436 = vmatpush3.bf16.msra.mxu1 %v469_v37 }
  0x50   :  { %437 = vmatprep.subr.bf16.mxu1 %v571_v0 }
  0x53   :  { %438 = vmatpush3.bf16.msra.mxu1 %v470_v47 }
  0x54   :  { %439 = vmatprep.subr.bf16.mxu1 %v571_v0 }
  0x57   :  { %440 = vmatpush3.bf16.msra.mxu1 %v471_v48 }
  0xb4   :  { %v120_v38 = vpop.permute.xlu1 %119 }
  0xb8   :  { %v112_v39 = vpop.permute.xlu0 %111  ;;  %v122_v41 = vpop.permute.xlu1 %121 }
  0xb9   :  { %v125_v40 = vsel %vm123_vm7, %v95_v17, %v112_v39 }
  0xba   :  { %v130_v44 = vsel %vm128_vm8, %v125_v40, %v120_v38 }
  0xbc   :  { %v114_v42 = vpop.permute.xlu0 %113 }
  0xbd   :  { %v127_v43 = vsel %vm123_vm7, %v96_v18, %v114_v42 }
  0xbe   :  { %v132_v45 = vsel %vm128_vm8, %v127_v43, %v122_v41 }
  0xbf   :  { %v376_v46 = vcombine.low %v130_v44, %v132_v45 }
  0xc1   :  { %422 = vmatmul.mubr.msk.bf16.vlgmr.msra.gmra.mrb[0].mxu0 %vm193_vm9, %v376_v46 }
 0x194   :  { %v231_v50 = vpop.f32.mrb[0].mxu0 }
 0x195   :  { %v232_v51 = vadd.f32 %v375_v49, %v231_v50  ;;  %v423_v52 = vpop.f32.mrb[1].mxu0 }
 0x196   :  { %v234_v53 = vpop.f32.mrb[2].mxu0 }
 0x197   :  { %v235_v54 = vadd.f32 %v375_v49, %v234_v53  ;;  %v424_v55 = vpop.f32.mrb[3].mxu0  ;;  %v238_v56 = vmax.f32 %v232_v51, 0.0 }
 0x199   :  { %v239_v57 = vmax.f32 %v235_v54, 0.0 }
 0x19b   :  { %v240_v58 = vpack.c.bf16 %v239_v57, %v238_v56 }
 0x19d   :  { %442 = vmatmul.mubr.bf16.vlgmr.msra.gmra.mrb[0].mxu1 %v240_v58 }
 0x270   :  { %v346_v60 = vpop.f32.mrb[0].mxu1 }
 0x271   :  { %v347_v61 = vadd.f32 %v384_v59, %v346_v60  ;;  %v443_v62 = vpop.f32.mrb[1].mxu1 }
 0x272   :  { %v349_v63 = vpop.f32.mrb[2].mxu1 }
 0x273   :  { %353 = vst [vmem:[#allocation8] sm:$0xff] %v347_v61  ;;  %v350_v0 = vadd.f32 %v384_v59, %v349_v63  ;;  %v444_v1 = vpop.f32.mrb[3].mxu1 }
 0x275   :  { %354 = vst [vmem:[#allocation8 + $0x8] sm:$0xff] %v350_v0 }
 0x276   :  { %549 = shalt.err (!%p546_p0)
}
 0x277   :  { %s550_s11 = scalar_lea.hbm %s708_s5, 256 }
 0x278   :  { %p551_p1 = scmp.ne.s32.totalorder %s708_s5, %s550_s11  ;;  %p554_p2 = scmp.lt.u32.totalorder %s550_s11, %s708_s5 }
 0x27a   :  { %p556_p3 = pnand %p554_p2, %p551_p1 }
 0x27c   :  { %559 = shalt.err (!%p556_p3)
}
 0x27d   :  { %s575_s16 = smov 128   ;;  %s576_s1 = smov 8  }
 0x27e   :  { %366 = dma.vmem_to_hbm [thread:$0]  %s361_s9, 256, %s708_s5, [#allocation4], %s575_s16, %s575_s16, %s576_s1  }
 0x27f   :  { %564 = dma.done.wait [#allocation4], 256  }
 0x280   :  { %565 = vsyncadd [#allocation4], 4294967040 }
 0x281   :  { %370 = vsyncpa [#allocation3], 1 }
 0x282   :  { %371 = vsyncpa [#allocation6], 1 }
 0x283   :  { %372 = vsyncpa [#allocation4], 1 }

</bundles_post_ra>
